<compile_context>
chip_gen: v7x
topology: tpu7x:2x2x1
jax: 0.10.0
libtpu: 0.0.40
codegen_flags: <defaults>
</compile_context>

<pallas_src>
import functools

import jax
import jax.numpy as jnp
from jax.experimental import pallas as pl
from jax.experimental.pallas import tpu as pltpu

HID1 = 400
HID2 = 300


def _round_up(n, m):
    return ((n + m - 1) // m) * m


def _choose_block_b(batch):
    """Pick the batch tile: big enough to occupy the MXU, >=2 grid steps for v7x megacore."""
    if batch <= 8:
        return batch
    target = 256                                   # good default for v5e/v6e/v7x at these sizes
    bb = min(target, _round_up(pl.cdiv(batch, 2), 8))
    return max(8, bb)


def ddpg_actor_kernel(x_ref, w1_ref, b1_ref, w2_ref, b2_ref, w3_ref, b3_ref, o_ref):
    # bf16 operands into the MXU, f32 accumulation; bias-add / ReLU on the VPU in f32.
    x = x_ref[...]                                                     # bf16 (block_b, obs)
    h1 = jnp.dot(x, w1_ref[...], preferred_element_type=jnp.float32) + b1_ref[...]
    h1 = jnp.maximum(h1, 0.0)
    h2 = jnp.dot(h1.astype(w2_ref.dtype), w2_ref[...],
                 preferred_element_type=jnp.float32) + b2_ref[...]
    h2 = jnp.maximum(h2, 0.0)
    out = jnp.dot(h2.astype(w3_ref.dtype), w3_ref[...],
                  preferred_element_type=jnp.float32) + b3_ref[...]
    o_ref[...] = out.astype(o_ref.dtype)


@functools.partial(jax.jit, static_argnames=("block_b",))
def ddpg_actor_forward(x, params, *, block_b=None):
    """x: (B, obs_size) float32. params: dict of transposed f32 weights/biases."""
    B, obs_size = x.shape
    act_size = params["w3"].shape[1]
    act_pad = _round_up(act_size, 128)            # lane-dense output slab

    if block_b is None:
        block_b = _choose_block_b(B)
    block_b = min(block_b, B)

    compute_dtype = jnp.bfloat16
    xc = x.astype(compute_dtype)
    w1 = params["w1"].astype(compute_dtype)        # (obs, 400)
    w2 = params["w2"].astype(compute_dtype)        # (400, 300)
    w3 = params["w3"]
    b1 = params["b1"].astype(jnp.float32)          # (1, 400)
    b2 = params["b2"].astype(jnp.float32)          # (1, 300)
    b3 = params["b3"].astype(jnp.float32)          # (1, act)
    if act_pad != act_size:                        # zero-pad last layer to 128-lane multiple
        w3 = jnp.pad(w3, ((0, 0), (0, act_pad - act_size)))
        b3 = jnp.pad(b3, ((0, 0), (0, act_pad - act_size)))
    w3 = w3.astype(compute_dtype)                  # (300, act_pad)

    grid = (pl.cdiv(B, block_b),)

    flops = 2 * B * (obs_size * HID1 + HID1 * HID2 + HID2 * act_pad)
    bytes_accessed = (
        xc.size * 2 + w1.size * 2 + w2.size * 2 + w3.size * 2
        + (b1.size + b2.size + b3.size) * 4 + B * act_pad * 4
    )

    out_padded = pl.pallas_call(
        ddpg_actor_kernel,
        out_shape=jax.ShapeDtypeStruct((B, act_pad), jnp.float32),
        grid_spec=pltpu.PrefetchScalarGridSpec(
            num_scalar_prefetch=0,
            grid=grid,
            in_specs=[
                pl.BlockSpec((block_b, obs_size), lambda i: (i, 0)),   # x tile over batch
                pl.BlockSpec((obs_size, HID1), lambda i: (0, 0)),      # w1 (resident)
                pl.BlockSpec((1, HID1), lambda i: (0, 0)),             # b1
                pl.BlockSpec((HID1, HID2), lambda i: (0, 0)),          # w2 (resident)
                pl.BlockSpec((1, HID2), lambda i: (0, 0)),             # b2
                pl.BlockSpec((HID2, act_pad), lambda i: (0, 0)),       # w3 (resident, padded)
                pl.BlockSpec((1, act_pad), lambda i: (0, 0)),          # b3 (padded)
            ],
            out_specs=pl.BlockSpec((block_b, act_pad), lambda i: (i, 0)),
        ),
        compiler_params=pltpu.CompilerParams(
            dimension_semantics=("parallel",),
            vmem_limit_bytes=32 * 1024 * 1024,
        ),
        cost_estimate=pl.CostEstimate(
            flops=flops, transcendentals=0, bytes_accessed=bytes_accessed),
    )(xc, w1, b1, w2, b2, w3, b3)

    return out_padded[:, :act_size]


def init_params(key, obs_size, act_size):
    """PyTorch-style U(-1/sqrt(fan_in), 1/sqrt(fan_in)) init; weights stored as (in, out)."""
    ks = jax.random.split(key, 6)

    def lin(kw, kb, fan_in, fan_out):
        bound = 1.0 / jnp.sqrt(fan_in)
        w = jax.random.uniform(kw, (fan_in, fan_out), jnp.float32, -bound, bound)
        b = jax.random.uniform(kb, (1, fan_out), jnp.float32, -bound, bound)
        return w, b

    w1, b1 = lin(ks[0], ks[1], obs_size, HID1)
    w2, b2 = lin(ks[2], ks[3], HID1, HID2)
    w3, b3 = lin(ks[4], ks[5], HID2, act_size)
    return {"w1": w1, "b1": b1, "w2": w2, "b2": b2, "w3": w3, "b3": b3}


def reference_forward_f32(x, params):
    h1 = jnp.maximum(x @ params["w1"] + params["b1"], 0.0)
    h2 = jnp.maximum(h1 @ params["w2"] + params["b2"], 0.0)
    return h2 @ params["w3"] + params["b3"]


def reference_forward_bf16(x, params):
    """Same numerics scheme as the kernel: bf16 operands, f32 accumulation/bias/ReLU."""
    cd = jnp.bfloat16
    h1 = jnp.dot(x.astype(cd), params["w1"].astype(cd),
                 preferred_element_type=jnp.float32) + params["b1"]
    h1 = jnp.maximum(h1, 0.0)
    h2 = jnp.dot(h1.astype(cd), params["w2"].astype(cd),
                 preferred_element_type=jnp.float32) + params["b2"]
    h2 = jnp.maximum(h2, 0.0)
    return jnp.dot(h2.astype(cd), params["w3"].astype(cd),
                   preferred_element_type=jnp.float32) + params["b3"]


if __name__ == "__main__":
    obs_size, act_size, batch = 32, 8, 64
    key = jax.random.PRNGKey(0)
    k_params, k_x = jax.random.split(key)
    params = init_params(k_params, obs_size, act_size)
    x = jax.random.normal(k_x, (batch, obs_size), jnp.float32)

    out = ddpg_actor_forward(x, params)          # block_b auto: 32 -> grid=(2,)
    out = jax.block_until_ready(out)
    assert out.shape == (batch, act_size)

    # Tight check against a reference using the identical bf16/f32 numerics scheme.
    ref_bf16 = reference_forward_bf16(x, params)
    assert jnp.allclose(out, ref_bf16, atol=2e-2, rtol=2e-2), "mismatch vs bf16 reference"

    # Loose sanity check against the pure-f32 PyTorch-equivalent forward.
    ref_f32 = reference_forward_f32(x, params)
    assert jnp.max(jnp.abs(out - ref_f32)) < 0.2, "diverged from f32 reference"

    print("KERNEL_OK")
</pallas_src>

<mosaic_0001>
module attributes {stable_mosaic.version = 11 : i64} {
  func.func @ddpg_actor_kernel(%arg0: i32, %arg1: memref<32x32xbf16, #tpu.memory_space<vmem>>, %arg2: memref<32x400xbf16, #tpu.memory_space<vmem>>, %arg3: memref<1x400xf32, #tpu.memory_space<vmem>>, %arg4: memref<400x300xbf16, #tpu.memory_space<vmem>>, %arg5: memref<1x300xf32, #tpu.memory_space<vmem>>, %arg6: memref<300x128xbf16, #tpu.memory_space<vmem>>, %arg7: memref<1x128xf32, #tpu.memory_space<vmem>>, %arg8: memref<32x128xf32, #tpu.memory_space<vmem>>) attributes {dimension_semantics = [#tpu.dimension_semantics<parallel>], iteration_bounds = array<i64: 2>, scalar_prefetch = 0 : i64, scratch_operands = 0 : i64, tpu.core_type = #tpu.core_type<tc>, window_params = [{transform_indices = @transform_0, window_bounds = array<i64: 32, 32>}, {pipeline_mode = #tpu.pipeline_mode<synchronous>, transform_indices = @transform_1, window_bounds = array<i64: 32, 400>}, {pipeline_mode = #tpu.pipeline_mode<synchronous>, transform_indices = @transform_2, window_bounds = array<i64: 1, 400>}, {pipeline_mode = #tpu.pipeline_mode<synchronous>, transform_indices = @transform_3, window_bounds = array<i64: 400, 300>}, {pipeline_mode = #tpu.pipeline_mode<synchronous>, transform_indices = @transform_4, window_bounds = array<i64: 1, 300>}, {pipeline_mode = #tpu.pipeline_mode<synchronous>, transform_indices = @transform_5, window_bounds = array<i64: 300, 128>}, {pipeline_mode = #tpu.pipeline_mode<synchronous>, transform_indices = @transform_6, window_bounds = array<i64: 1, 128>}, {transform_indices = @transform_7, window_bounds = array<i64: 32, 128>}]} {
    %c0 = arith.constant 0 : index
    %c0_0 = arith.constant 0 : index
    %0 = vector.load %arg1[%c0, %c0_0] : memref<32x32xbf16, #tpu.memory_space<vmem>>, vector<32x32xbf16>
    %c0_1 = arith.constant 0 : index
    %c0_2 = arith.constant 0 : index
    %1 = vector.load %arg2[%c0_1, %c0_2] : memref<32x400xbf16, #tpu.memory_space<vmem>>, vector<32x400xbf16>
    %cst = arith.constant dense<0.000000e+00> : vector<32x400xf32>
    %2 = tpu.matmul %0, %1, %cst {dimension_numbers = #tpu.dot_dimension_numbers<[1], [0], [0], [1], [0, 0, 1, 1], [], []>} : vector<32x32xbf16>, vector<32x400xbf16>, vector<32x400xf32> -> vector<32x400xf32>
    %c0_3 = arith.constant 0 : index
    %c0_4 = arith.constant 0 : index
    %3 = vector.load %arg3[%c0_3, %c0_4] : memref<1x400xf32, #tpu.memory_space<vmem>>, vector<1x400xf32>
    %4 = vector.broadcast %3 : vector<1x400xf32> to vector<32x400xf32>
    %5 = arith.addf %2, %4 : vector<32x400xf32>
    %cst_5 = arith.constant 0.000000e+00 : f32
    %6 = vector.broadcast %cst_5 : f32 to vector<32x400xf32>
    %7 = arith.maximumf %5, %6 : vector<32x400xf32>
    %8 = arith.truncf %7 : vector<32x400xf32> to vector<32x400xbf16>
    %c0_6 = arith.constant 0 : index
    %c0_7 = arith.constant 0 : index
    %9 = vector.load %arg4[%c0_6, %c0_7] : memref<400x300xbf16, #tpu.memory_space<vmem>>, vector<400x300xbf16>
    %cst_8 = arith.constant dense<0.000000e+00> : vector<32x300xf32>
    %10 = tpu.matmul %8, %9, %cst_8 {dimension_numbers = #tpu.dot_dimension_numbers<[1], [0], [0], [1], [0, 0, 1, 1], [], []>} : vector<32x400xbf16>, vector<400x300xbf16>, vector<32x300xf32> -> vector<32x300xf32>
    %c0_9 = arith.constant 0 : index
    %c0_10 = arith.constant 0 : index
    %11 = vector.load %arg5[%c0_9, %c0_10] : memref<1x300xf32, #tpu.memory_space<vmem>>, vector<1x300xf32>
    %12 = vector.broadcast %11 : vector<1x300xf32> to vector<32x300xf32>
    %13 = arith.addf %10, %12 : vector<32x300xf32>
    %cst_11 = arith.constant 0.000000e+00 : f32
    %14 = vector.broadcast %cst_11 : f32 to vector<32x300xf32>
    %15 = arith.maximumf %13, %14 : vector<32x300xf32>
    %16 = arith.truncf %15 : vector<32x300xf32> to vector<32x300xbf16>
    %c0_12 = arith.constant 0 : index
    %c0_13 = arith.constant 0 : index
    %17 = vector.load %arg6[%c0_12, %c0_13] : memref<300x128xbf16, #tpu.memory_space<vmem>>, vector<300x128xbf16>
    %cst_14 = arith.constant dense<0.000000e+00> : vector<32x128xf32>
    %18 = tpu.matmul %16, %17, %cst_14 {dimension_numbers = #tpu.dot_dimension_numbers<[1], [0], [0], [1], [0, 0, 1, 1], [], []>} : vector<32x300xbf16>, vector<300x128xbf16>, vector<32x128xf32> -> vector<32x128xf32>
    %c0_15 = arith.constant 0 : index
    %c0_16 = arith.constant 0 : index
    %19 = vector.load %arg7[%c0_15, %c0_16] : memref<1x128xf32, #tpu.memory_space<vmem>>, vector<1x128xf32>
    %20 = vector.broadcast %19 : vector<1x128xf32> to vector<32x128xf32>
    %21 = arith.addf %18, %20 : vector<32x128xf32>
    %c0_17 = arith.constant 0 : index
    %c0_18 = arith.constant 0 : index
    %22 = vector.load %arg8[%c0_17, %c0_18] : memref<32x128xf32, #tpu.memory_space<vmem>>, vector<32x128xf32>
    tpu.vector_store %arg8[%c0_17, %c0_18], %21 {strides = array<i32>} : memref<32x128xf32, #tpu.memory_space<vmem>>, vector<32x128xf32>,
    return
  }
  func.func @transform_0(%arg0: i32) -> (i32, i32) {
    %c0_i32 = arith.constant 0 : i32
    %c0_i32_0 = arith.constant 0 : i32
    return %arg0, %c0_i32 : i32, i32
  }
  func.func @transform_1(%arg0: i32) -> (i32, i32) {
    %c0_i32 = arith.constant 0 : i32
    %c0_i32_0 = arith.constant 0 : i32
    %c0_i32_1 = arith.constant 0 : i32
    return %c0_i32, %c0_i32_0 : i32, i32
  }
  func.func @transform_2(%arg0: i32) -> (i32, i32) {
    %c0_i32 = arith.constant 0 : i32
    %c0_i32_0 = arith.constant 0 : i32
    %c0_i32_1 = arith.constant 0 : i32
    return %c0_i32, %c0_i32_0 : i32, i32
  }
  func.func @transform_3(%arg0: i32) -> (i32, i32) {
    %c0_i32 = arith.constant 0 : i32
    %c0_i32_0 = arith.constant 0 : i32
    %c0_i32_1 = arith.constant 0 : i32
    return %c0_i32, %c0_i32_0 : i32, i32
  }
  func.func @transform_4(%arg0: i32) -> (i32, i32) {
    %c0_i32 = arith.constant 0 : i32
    %c0_i32_0 = arith.constant 0 : i32
    %c0_i32_1 = arith.constant 0 : i32
    return %c0_i32, %c0_i32_0 : i32, i32
  }
  func.func @transform_5(%arg0: i32) -> (i32, i32) {
    %c0_i32 = arith.constant 0 : i32
    %c0_i32_0 = arith.constant 0 : i32
    %c0_i32_1 = arith.constant 0 : i32
    return %c0_i32, %c0_i32_0 : i32, i32
  }
  func.func @transform_6(%arg0: i32) -> (i32, i32) {
    %c0_i32 = arith.constant 0 : i32
    %c0_i32_0 = arith.constant 0 : i32
    %c0_i32_1 = arith.constant 0 : i32
    return %c0_i32, %c0_i32_0 : i32, i32
  }
  func.func @transform_7(%arg0: i32) -> (i32, i32) {
    %c0_i32 = arith.constant 0 : i32
    %c0_i32_0 = arith.constant 0 : i32
    return %arg0, %c0_i32 : i32, i32
  }
}

</mosaic_0001>

<bundles_post_ra>
// kernel: ddpg_actor_forward.1
= control target key start
LH: loop header
LB: loop body
LE: loop exit
PB: predicated region body
PF: predicated region fallthrough
CT: control target
= control target key end

     0   :  { %s1982_s24 = smov 0   ;;  %s2363_s0 = inlined_call_operand.vmem [shape: bf16[64,32], index: 0, kind: input, shape index: {}]   ;;  %s2364_s1 = inlined_call_operand.vmem [shape: bf16[32,400], index: 1, kind: input, shape index: {}]   ;;  %s2365_s2 = inlined_call_operand.vmem [shape: f32[1,400], index: 2, kind: input, shape index: {}]   ;;  %s2366_s3 = inlined_call_operand.vmem [shape: bf16[400,300], index: 3, kind: input, shape index: {}]   ;;  %s2367_s4 = inlined_call_operand.vmem [shape: f32[1,300], index: 4, kind: input, shape index: {}]   ;;  %s2368_s5 = inlined_call_operand.vmem [shape: bf16[300,128], index: 5, kind: input, shape index: {}]   ;;  %s2369_s6 = inlined_call_operand.vmem [shape: f32[1,128], index: 6, kind: input, shape index: {}]   ;;  %s2370_s7 = inlined_call_operand.vmem [shape: f32[64,128], index: 7, kind: output, shape index: {}]  }
   0x1 LB: > { %s1577_s25 = sadd.s32 4294967295, %s1939_s24   ;;  %p1581_p0 = scmp.ge.s32.totalorder %s1939_s24, 1  ;;  %s1939_s24 = sphi %s1982_s24, %s17_s24  }
   0x2   : > { %p238_p1 = scmp.lt.s32.totalorder %s1939_s24, 3 }
   0x4   : > { %p239_p2 = pnand %p1581_p0, %p238_p1 }
   0x5   : > { %v1800_v0 = vld [vmem:[%s2364_s1 + $0x4] ss:$16 sps:$4 sm:$0xff] (!%p239_p2)   ;;  %s1582_s28 = sshll.u32 (!%p239_p2), %s1577_s25, 2  ;;  %v1802_v1 = vld [vmem:[%s2364_s1] ss:$16 sps:$4 sm:$0xff] (!%p239_p2)   ;;  %v1941_v2 = vmov (!%p239_p2), 0   ;;  %v297_v60 = vlaneseq (!%p239_p2) }
   0x6   : > { %242 = sbr.rel (%p239_p2) target bundleno = 727 (0x2d7), region = 48  ;;  %406 = vmatprep.mubr.bf16.mxu0 (!%p239_p2), %v1941_v2  ;;  %p271_p3 = scmp.lt.s32.totalorder (!%p239_p2), %s1582_s28, 7  ;;  %459 = vmatprep.mubr.bf16.mxu1 (!%p239_p2), %v1941_v2  ;;  %v1803_v3 = vld [vmem:[%s2364_s1 + $0x24] ss:$16 sps:$4 sm:$0xff] (!%p239_p2)   ;;  %v1805_v4 = vld [vmem:[%s2364_s1 + $0x20] ss:$16 sps:$4 sm:$0xff] (!%p239_p2)  }
   0x7   : > { %374 = vmatprep.subr.bf16.mxu0 (!%p239_p2), %v1800_v0  ;;  %v1808_v5 = vld [vmem:[%s2364_s1 + $0xc] ss:$16 sps:$4 sm:$0xff] (!%p239_p2)   ;;  %v1810_v6 = vld [vmem:[%s2364_s1 + $0x8] ss:$16 sps:$4 sm:$0xff] (!%p239_p2)   ;;  %v1816_v10 = vld [vmem:[%s2366_s3 + $0x4] ss:$12 sps:$4 sm:$0xff] (!%p239_p2)  }
   0x8   : > { %375 = vmatpush1.bf16.msra.mxu0 (!%p239_p2), %v1802_v1  ;;  %v1811_v7 = vld [vmem:[%s2364_s1 + $0x2c] ss:$16 sps:$4 sm:$0xff] (!%p239_p2)   ;;  %427 = vmatprep.subr.bf16.mxu1 (!%p239_p2), %v1808_v5  ;;  %v1813_v8 = vld [vmem:[%s2364_s1 + $0x28] ss:$16 sps:$4 sm:$0xff] (!%p239_p2)   ;;  %vm367_vm0 = vcmask (!%p239_p2), 261120   ;;  %v2176_v61 = vshrl.u32 (!%p239_p2), %v297_v60, 7 }
   0x9   : > { %376 = vmatprep.subr.bf16.mxu0 (!%p239_p2), %v1803_v3  ;;  %428 = vmatpush1.bf16.msra.mxu1 (!%p239_p2), %v1810_v6  ;;  %v1814_v9 = vld [vmem:[%s2366_s3] ss:$12 sps:$4 sm:$0xff] (!%p239_p2)   ;;  %v1819_v12 = vld [vmem:[%s2366_s3 + $0x1c] ss:$12 sps:$4 sm:$0xff] (!%p239_p2)   ;;  %v1817_v13 = vld [vmem:[%s2366_s3 + $0x18] ss:$12 sps:$4 sm:$0xff] (!%p239_p2)  }
   0xa   : > { %429 = vmatprep.subr.bf16.mxu1 (!%p239_p2), %v1811_v7  ;;  %v1822_v14 = vld [vmem:[%s2366_s3 + $0x34] ss:$12 sps:$4 sm:$0xff] (!%p239_p2)   ;;  %v1820_v16 = vld [vmem:[%s2366_s3 + $0x30] ss:$12 sps:$4 sm:$0xff] (!%p239_p2)   ;;  %v1825_v17 = vld [vmem:[%s2366_s3 + $0x4c] ss:$12 sps:$4 sm:$0xff] (!%p239_p2)  }
   0xb   : > { %v1823_v18 = vld [vmem:[%s2366_s3 + $0x48] ss:$12 sps:$4 sm:$0xff] (!%p239_p2)   ;;  %v1828_v19 = vld [vmem:[%s2366_s3 + $0x64] ss:$12 sps:$4 sm:$0xff] (!%p239_p2)   ;;  %v1826_v22 = vld [vmem:[%s2366_s3 + $0x60] ss:$12 sps:$4 sm:$0xff] (!%p239_p2)  }
   0xc   : > { %377 = vmatpush1.bf16.msra.mxu0 (!%p239_p2), %v1805_v4  ;;  %v1841_v20 = vld [vmem:[%s2366_s3 + $0xc8] ss:$12 sps:$4 sm:$0xff] (!%p239_p2)   ;;  %v1846_v24 = vld [vmem:[%s2366_s3 + $0xe0] ss:$12 sps:$4 sm:$0xff] (!%p239_p2)   ;;  %v1829_v26 = vld [vmem:[%s2366_s3 + $0x78] ss:$12 sps:$4 sm:$0xff] (!%p239_p2)  }
   0xd   : > { %s2372_s28 = smov (!%p271_p3, %s1582_s28), 7  ;;  %1028 = vmatprep.subr.bf16.mxu0 %v1816_v10  ;;  %430 = vmatpush1.bf16.msra.mxu1 %v1813_v8  ;;  %v1842_v21 = vld [vmem:[%s2366_s3 + $0x8] ss:$12 sps:$4 sm:$0xff]   ;;  %v1847_v25 = vld [vmem:[%s2366_s3 + $0x20] ss:$12 sps:$4 sm:$0xff]   ;;  %v299_v62 = vsub.s32 0, %v2176_v61 }
   0xe   : > { %s1583_s18 = sshll.u32 %s2372_s28, 2  ;;  %v1831_v23 = vld [vmem:[%s2366_s3 + $0x7c] ss:$12 sps:$4 sm:$0xff]   ;;  %1703 = vmatprep.subr.bf16.mxu1 %v1841_v20  ;;  %v1851_v27 = vld [vmem:[%s2366_s3 + $0xf8] ss:$12 sps:$4 sm:$0xff]   ;;  %v303_v0 = vsub.s32 1, %v2176_v61 }
   0xf   : > { %s274_s23 = scalar_lea.vmem %s2363_s0, %s1583_s18  ;;  %v1852_v28 = vld [vmem:[%s2366_s3 + $0x38] ss:$12 sps:$4 sm:$0xff]   ;;  %v1834_v29 = vld [vmem:[%s2366_s3 + $0x94] ss:$12 sps:$4 sm:$0xff]   ;;  %v1832_v30 = vld [vmem:[%s2366_s3 + $0x90] ss:$12 sps:$4 sm:$0xff]  }
  0x10   : > { %v1806_v11 = vld [vmem:[%s274_s23] sm:$0xff]   ;;  %v1807_v15 = vld [vmem:[%s274_s23 + $0x8] sm:$0xff]   ;;  %v1856_v31 = vld [vmem:[%s2366_s3 + $0x110] ss:$12 sps:$4 sm:$0xff]   ;;  %v307_v1 = vsub.s32 2, %v2176_v61  ;;  %v311_v4 = vsub.s32 3, %v2176_v61 }
  0x11   : > { %1596 = vmatmul.mubr.msk.bf16.vlgmr.msra.gmra.mrb[0].mxu0 %vm367_vm0, %v1806_v11  ;;  %1598 = vmatmul.mubr.msk.bf16.vlgmr.msra.gmra.mrb[0].mxu1 %vm367_vm0, %v1806_v11  ;;  %v1857_v32 = vld [vmem:[%s2366_s3 + $0x50] ss:$12 sps:$4 sm:$0xff]   ;;  %v1837_v33 = vld [vmem:[%s2366_s3 + $0xac] ss:$12 sps:$4 sm:$0xff]   ;;  %v1861_v34 = vld [vmem:[%s2366_s3 + $0x128] ss:$12 sps:$4 sm:$0xff]  }
  0x12   : > { %416 = vmatprep.mubr.bf16.mxu0 %v1941_v2  ;;  %1029 = vmatpush1.bf16.msra.mxu0 %v1814_v9  ;;  %v1835_v35 = vld [vmem:[%s2366_s3 + $0xa8] ss:$12 sps:$4 sm:$0xff]   ;;  %v1840_v36 = vld [vmem:[%s2366_s3 + $0xc4] ss:$12 sps:$4 sm:$0xff]   ;;  %v1866_v38 = vld [vmem:[%s2366_s3 + $0x140] ss:$12 sps:$4 sm:$0xff]  }
  0x13   : > { %1030 = vmatprep.subr.bf16.mxu0 %v1819_v12  ;;  %469 = vmatprep.mubr.bf16.mxu1 %v1941_v2  ;;  %v1862_v37 = vld [vmem:[%s2366_s3 + $0x68] ss:$12 sps:$4 sm:$0xff]   ;;  %v1838_v39 = vld [vmem:[%s2366_s3 + $0xc0] ss:$12 sps:$4 sm:$0xff]   ;;  %v1843_v42 = vld [vmem:[%s2366_s3 + $0xd8] ss:$12 sps:$4 sm:$0xff]  }
  0x14   : > { %1704 = vmatpush3.bf16.msra.mxu1 %v1842_v21  ;;  %v1845_v40 = vld [vmem:[%s2366_s3 + $0xdc] ss:$12 sps:$4 sm:$0xff]   ;;  %v1867_v41 = vld [vmem:[%s2366_s3 + $0x80] ss:$12 sps:$4 sm:$0xff]   ;;  %v1860_v47 = vld [vmem:[%s2366_s3 + $0x124] ss:$12 sps:$4 sm:$0xff]  }
  0x15   : > { %1705 = vmatprep.subr.bf16.mxu1 %v1846_v24  ;;  %v1850_v43 = vld [vmem:[%s2366_s3 + $0xf4] ss:$12 sps:$4 sm:$0xff]   ;;  %v1848_v44 = vld [vmem:[%s2366_s3 + $0xf0] ss:$12 sps:$4 sm:$0xff]   ;;  %v1855_v45 = vld [vmem:[%s2366_s3 + $0x10c] ss:$12 sps:$4 sm:$0xff]  }
  0x16   : > { %1031 = vmatpush1.bf16.msra.mxu0 %v1817_v13  ;;  %v1853_v46 = vld [vmem:[%s2366_s3 + $0x108] ss:$12 sps:$4 sm:$0xff]   ;;  %v1858_v48 = vld [vmem:[%s2366_s3 + $0x120] ss:$12 sps:$4 sm:$0xff]   ;;  %v1863_v50 = vld [vmem:[%s2366_s3 + $0x138] ss:$12 sps:$4 sm:$0xff]  }
  0x17   : > { %1032 = vmatprep.subr.bf16.mxu0 %v1822_v14  ;;  %v1865_v49 = vld [vmem:[%s2366_s3 + $0x13c] ss:$12 sps:$4 sm:$0xff]   ;;  %v1870_v51 = vld [vmem:[%s2366_s3 + $0x154] ss:$12 sps:$4 sm:$0xff]   ;;  %v1871_v52 = vld [vmem:[%s2366_s3 + $0x158] ss:$12 sps:$4 sm:$0xff]  }
  0x18   : > { %1706 = vmatpush3.bf16.msra.mxu1 %v1847_v25  ;;  %v1868_v53 = vld [vmem:[%s2366_s3 + $0x150] ss:$12 sps:$4 sm:$0xff]   ;;  %v1872_v54 = vld [vmem:[%s2366_s3 + $0x98] ss:$12 sps:$4 sm:$0xff]   ;;  %v1873_v57 = vld [vmem:[%s2366_s3 + $0x168] ss:$12 sps:$4 sm:$0xff]  }
  0x19   : > { %1597 = vmatmul.mubr.msk.bf16.gmra.mrb[4].mxu0 %vm367_vm0, %v1807_v15  ;;  %1599 = vmatmul.mubr.msk.bf16.gmra.mrb[4].mxu1 %vm367_vm0, %v1807_v15  ;;  %v1875_v55 = vld [vmem:[%s2366_s3 + $0x16c] ss:$12 sps:$4 sm:$0xff]   ;;  %v1876_v56 = vld [vmem:[%s2366_s3 + $0x170] ss:$12 sps:$4 sm:$0xff]   ;;  %v295_v63 = vld [vmem:[%s2365_s2] sm:$0xf] }
  0x1a   : > { %1033 = vmatpush1.bf16.msra.mxu0 %v1820_v16  ;;  %1707 = vmatprep.subr.bf16.mxu1 %v1851_v27  ;;  %v1877_v58 = vld [vmem:[%s2366_s3 + $0xb0] ss:$12 sps:$4 sm:$0xff]   ;;  %v300_v3 = vrot.slane %v295_v63, %v299_v62  ;;  %v304_v5 = vrot.slane %v295_v63, %v303_v0  ;;  %v308_v7 = vrot.slane %v295_v63, %v307_v1  ;;  %vm1021_vm1 = vcmask 130048   ;;  %s1585_s8 = sshll.u32 %s2372_s28, 3 }
  0x1b   : > { %1034 = vmatprep.subr.bf16.mxu0 %v1825_v17  ;;  %v1880_v59 = vld [vmem:[%s2366_s3 + $0x184] ss:$12 sps:$4 sm:$0xff]   ;;  %v312_v10 = vrot.slane %v295_v63, %v311_v4  ;;  %vm1415_vm2 = vcmask 1045504   ;;  %vm1408_vm3 = vcmask 359424   ;;  %s280_s11 = scalar_lea.vmem %s2370_s7, %s1585_s8 }
  0x1c   : > { %1708 = vmatpush3.bf16.msra.mxu1 %v1852_v28 }
  0x1d   : > { %1709 = vmatprep.subr.bf16.mxu1 %v1856_v31 }
  0x1e   : > { %1035 = vmatpush1.bf16.msra.mxu0 %v1823_v18 }
  0x1f   : > { %1036 = vmatprep.subr.bf16.mxu0 %v1828_v19 }
  0x20   : > { %1710 = vmatpush3.bf16.msra.mxu1 %v1857_v32  ;;  %v1878_v32 = vld [vmem:[%s2366_s3 + $0x180] ss:$12 sps:$4 sm:$0xff]  }
  0x21   : > { %1711 = vmatprep.subr.bf16.mxu1 %v1861_v34 }
  0x22   : > { %1037 = vmatpush1.bf16.msra.mxu0 %v1826_v22 }
  0x23   : > { %1038 = vmatprep.subr.bf16.mxu0 %v1831_v23 }
  0x24   : > { %1712 = vmatpush3.bf16.msra.mxu1 %v1862_v37 }
  0x25   : > { %1713 = vmatprep.subr.bf16.mxu1 %v1866_v38 }
  0x26   : > { %1039 = vmatpush1.bf16.msra.mxu0 %v1829_v26 }
  0x27   : > { %1040 = vmatprep.subr.bf16.mxu0 %v1834_v29 }
  0x28   : > { %1714 = vmatpush3.bf16.msra.mxu1 %v1867_v41 }
  0x29   : > { %1715 = vmatprep.subr.bf16.mxu1 %v1871_v52 }
  0x2a   : > { %1041 = vmatpush1.bf16.msra.mxu0 %v1832_v30 }
  0x2b   : > { %1042 = vmatprep.subr.bf16.mxu0 %v1837_v33  ;;  %v1881_v33 = vld [vmem:[%s2366_s3 + $0x188] ss:$12 sps:$4 sm:$0xff]  }
  0x2c   : > { %1716 = vmatpush3.bf16.msra.mxu1 %v1872_v54  ;;  %v1888_v54 = vld [vmem:[%s2366_s3 + $0x1b4] ss:$12 sps:$4 sm:$0xff]  }
  0x2d   : > { %1717 = vmatprep.subr.bf16.mxu1 %v1876_v56 }
  0x2e   : > { %1043 = vmatpush1.bf16.msra.mxu0 %v1835_v35 }
  0x2f   : > { %1044 = vmatprep.subr.bf16.mxu0 %v1840_v36  ;;  %v1884_v36 = vld [vmem:[%s2366_s3 + $0x19c] ss:$12 sps:$4 sm:$0xff]  }
  0x30   : > { %1718 = vmatpush3.bf16.msra.mxu1 %v1877_v58 }
  0x31   : > { %1183 = vmatprep.subr.bf16.mxu1 %v1941_v2 }
  0x32   : > { %1045 = vmatpush1.bf16.msra.mxu0 %v1838_v39 }
  0x33   : > { %1046 = vmatprep.subr.bf16.mxu0 %v1845_v40 }
  0x36   : > { %1047 = vmatpush1.bf16.msra.mxu0 %v1843_v42 }
  0x37   : > { %1048 = vmatprep.subr.bf16.mxu0 %v1850_v43 }
  0x3a   : > { %1049 = vmatpush1.bf16.msra.mxu0 %v1848_v44 }
  0x3b   : > { %1050 = vmatprep.subr.bf16.mxu0 %v1855_v45 }
  0x3e   : > { %1051 = vmatpush1.bf16.msra.mxu0 %v1853_v46 }
  0x3f   : > { %1052 = vmatprep.subr.bf16.mxu0 %v1860_v47 }
  0x42   : > { %1053 = vmatpush1.bf16.msra.mxu0 %v1858_v48  ;;  %v1882_v48 = vld [vmem:[%s2366_s3 + $0x198] ss:$12 sps:$4 sm:$0xff]  }
  0x43   : > { %1054 = vmatprep.subr.bf16.mxu0 %v1865_v49  ;;  %v1885_v49 = vld [vmem:[%s2366_s3 + $0x1a0] ss:$12 sps:$4 sm:$0xff]  }
  0x46   : > { %1055 = vmatpush1.bf16.msra.mxu0 %v1863_v50 }
  0x47   : > { %1056 = vmatprep.subr.bf16.mxu0 %v1870_v51 }
  0x4a   : > { %1057 = vmatpush1.bf16.msra.mxu0 %v1868_v53 }
  0x4b   : > { %1058 = vmatprep.subr.bf16.mxu0 %v1875_v55 }
  0x4e   : > { %1059 = vmatpush1.bf16.msra.mxu0 %v1873_v57 }
  0x4f   : > { %1081 = vmatprep.subr.bf16.mxu0 %v1880_v59 }
  0xe4   : > { %v408_v6 = vpop.f32.mrb[0].mxu0  ;;  %v461_v15 = vpop.f32.mrb[0].mxu1 }
  0xe5   : > { %v409_v8 = vadd.f32 %v408_v6, %v300_v3  ;;  %v410_v9 = vpop.f32.mrb[1].mxu0  ;;  %v462_v17 = vadd.f32 %v461_v15, %v308_v7  ;;  %v463_v18 = vpop.f32.mrb[1].mxu1  ;;  %v1893_v15 = vld [vmem:[%s2366_s3 + $0x1d0] ss:$12 sps:$4 sm:$0xff]  }
  0xe6   : > { %v411_v11 = vadd.f32 %v410_v9, %v304_v5  ;;  %v412_v12 = vpop.f32.mrb[2].mxu0  ;;  %v464_v21 = vadd.f32 %v463_v18, %v312_v10  ;;  %v465_v22 = vpop.f32.mrb[2].mxu1  ;;  %v1897_v18 = vld [vmem:[%s2366_s3 + $0x1e8] ss:$12 sps:$4 sm:$0xff]  }
  0xe7   : > { %v413_v13 = vadd.f32 %v412_v12, %v300_v3  ;;  %v414_v14 = vpop.f32.mrb[3].mxu0  ;;  %v480_v19 = vmax.f32 %v409_v8, 0.0  ;;  %v482_v25 = vmax.f32 %v462_v17, 0.0  ;;  %v466_v26 = vadd.f32 %v465_v22, %v308_v7  ;;  %v467_v27 = vpop.f32.mrb[3].mxu1  ;;  %v1889_v8 = vld [vmem:[%s2366_s3 + $0x1b8] ss:$12 sps:$4 sm:$0xff]  }
  0xe8   : > { %v415_v16 = vadd.f32 %v414_v14, %v304_v5  ;;  %v481_v23 = vmax.f32 %v411_v11, 0.0  ;;  %v483_v29 = vmax.f32 %v464_v21, 0.0  ;;  %v468_v30 = vadd.f32 %v467_v27, %v312_v10  ;;  %v1890_v14 = vld [vmem:[%s2366_s3 + $0x1c8] ss:$12 sps:$4 sm:$0xff]   ;;  %v1894_v17 = vld [vmem:[%s2366_s3 + $0x1e0] ss:$12 sps:$4 sm:$0xff]  }
  0xe9   : > { %v484_v20 = vmax.f32 %v413_v13, 0.0  ;;  %v486_v35 = vmax.f32 %v466_v26, 0.0  ;;  %v1901_v21 = vld [vmem:[%s2366_s3 + $0x200] ss:$12 sps:$4 sm:$0xff]   ;;  %v1906_v26 = vld [vmem:[%s2366_s3 + $0x228] ss:$12 sps:$4 sm:$0xff]  }
  0xea   : > { %v485_v24 = vmax.f32 %v415_v16, 0.0  ;;  %v487_v39 = vmax.f32 %v468_v30, 0.0  ;;  %v1896_v16 = vld [vmem:[%s2366_s3 + $0x1e4] ss:$12 sps:$4 sm:$0xff]   ;;  %v1904_v22 = vld [vmem:[%s2366_s3 + $0x214] ss:$12 sps:$4 sm:$0xff]  }
  0xeb   : > { %v496_v28 = vpack.c.bf16 %v484_v20, %v480_v19  ;;  %v2200_v42 = vpack.c.bf16 %v486_v35, %v482_v25  ;;  %v1900_v19 = vld [vmem:[%s2366_s3 + $0x1fc] ss:$12 sps:$4 sm:$0xff]   ;;  %v1898_v20 = vld [vmem:[%s2366_s3 + $0x1f8] ss:$12 sps:$4 sm:$0xff]   ;;  %v1919_v35 = vld [vmem:[%s2368_s5 + $0x10] sm:$0xff]  }
  0xec   : > { %v497_v31 = vpack.c.bf16 %v485_v24, %v481_v23  ;;  %v418_v34 = vpop.f32.mrb[4].mxu0  ;;  %v499_v46 = vpack.c.bf16 %v487_v39, %v483_v29  ;;  %v471_v47 = vpop.f32.mrb[4].mxu1  ;;  %v1902_v23 = vld [vmem:[%s2366_s3 + $0x210] ss:$12 sps:$4 sm:$0xff]   ;;  %v1905_v24 = vld [vmem:[%s2366_s3 + $0x218] ss:$12 sps:$4 sm:$0xff]  }
  0xed   : > { %v419_v37 = vadd.f32 %v418_v34, %v300_v3  ;;  %v420_v38 = vpop.f32.mrb[5].mxu0  ;;  %v472_v52 = vadd.f32 %v471_v47, %v308_v7  ;;  %v473_v53 = vpop.f32.mrb[5].mxu1  ;;  %v1908_v25 = vld [vmem:[%s2366_s3 + $0x22c] ss:$12 sps:$4 sm:$0xff]   ;;  %v1909_v27 = vld [vmem:[%s2366_s3 + $0x230] ss:$12 sps:$4 sm:$0xff]  }
  0xee   : > { %1060 = vmatprep.mubr.bf16.mxu0 %v497_v31  ;;  %1166 = vmatprep.mubr.bf16.mxu1 %v497_v31  ;;  %v421_v40 = vadd.f32 %v420_v38, %v304_v5  ;;  %v422_v41 = vpop.f32.mrb[6].mxu0  ;;  %v474_v56 = vadd.f32 %v473_v53, %v312_v10  ;;  %v475_v57 = vpop.f32.mrb[6].mxu1  ;;  %v1910_v29 = vld [vmem:[%s2366_s3 + $0x240] ss:$12 sps:$4 sm:$0xff]   ;;  %v1913_v30 = vld [vmem:[%s2366_s3 + $0x248] ss:$12 sps:$4 sm:$0xff]  }
  0xef   : > { %1061 = vmatmul.mubr.bf16.vlgmr.msra.gmra.mrb[8].mxu0 %v496_v28  ;;  %1167 = vmatmul.mubr.bf16.vlgmr.msra.gmra.mrb[8].mxu1 %v496_v28  ;;  %v488_v43 = vmax.f32 %v419_v37, 0.0  ;;  %v423_v44 = vadd.f32 %v422_v41, %v300_v3  ;;  %v424_v45 = vpop.f32.mrb[7].mxu0  ;;  %v490_v59 = vmax.f32 %v472_v52, 0.0  ;;  %v476_v60 = vadd.f32 %v475_v57, %v308_v7  ;;  %v477_v63 = vpop.f32.mrb[7].mxu1  ;;  %v1892_v7 = vld [vmem:[%s2366_s3 + $0x1cc] ss:$12 sps:$4 sm:$0xff]  }
  0xf0   : > { %1082 = vmatpush1.bf16.msra.mxu0 %v1878_v32  ;;  %1184 = vmatpush1.bf16.msra.mxu1 %v1881_v33  ;;  %v489_v50 = vmax.f32 %v421_v40, 0.0  ;;  %v425_v51 = vadd.f32 %v424_v45, %v304_v5  ;;  %v491_v4 = vmax.f32 %v474_v56, 0.0  ;;  %v478_v6 = vadd.f32 %v477_v63, %v312_v10  ;;  %v1886_v5 = vld [vmem:[%s2366_s3 + $0x1b0] ss:$12 sps:$4 sm:$0xff]   ;;  %v1914_v31 = vld [vmem:[%s2368_s5 + $0x40] sm:$0xff]   ;;  %v1916_v32 = vld [vmem:[%s2368_s5 + $0x48] sm:$0xff]  }
  0xf1   : > { %1083 = vmatprep.subr.bf16.mxu0 %v1884_v36  ;;  %1185 = vmatprep.subr.bf16.mxu1 %v1941_v2  ;;  %v492_v55 = vmax.f32 %v423_v44, 0.0  ;;  %v494_v11 = vmax.f32 %v476_v60, 0.0  ;;  %v1912_v28 = vld [vmem:[%s2366_s3 + $0x244] ss:$12 sps:$4 sm:$0xff]   ;;  %v1917_v33 = vld [vmem:[%s2368_s5 + $0x8] sm:$0xff]   ;;  %v1920_v36 = vld [vmem:[%s2368_s5 + $0x58] sm:$0xff]  }
  0xf2   : > { %v493_v58 = vmax.f32 %v425_v51, 0.0  ;;  %v495_v10 = vmax.f32 %v478_v6, 0.0  ;;  %v1918_v34 = vld [vmem:[%s2368_s5 + $0x50] sm:$0xff]   ;;  %v1921_v37 = vld [vmem:[%s2368_s5 + $0x18] sm:$0xff]   ;;  %v1922_v38 = vld [vmem:[%s2368_s5 + $0x60] sm:$0xff]  }
  0xf3   : > { %v500_v3 = vpack.c.bf16 %v492_v55, %v488_v43  ;;  %v502_v12 = vpack.c.bf16 %v494_v11, %v490_v59  ;;  %v1923_v39 = vld [vmem:[%s2368_s5 + $0x20] sm:$0xff]   ;;  %v1924_v40 = vld [vmem:[%s2368_s5 + $0x68] sm:$0xff]   ;;  %v1927_v43 = vld [vmem:[%s2368_s5 + $0x30] sm:$0xff]  }
  0xf4   : > { %1084 = vmatpush1.bf16.msra.mxu0 %v1882_v48  ;;  %1186 = vmatpush1.bf16.msra.mxu1 %v1885_v49  ;;  %v501_v9 = vpack.c.bf16 %v493_v58, %v489_v50  ;;  %v503_v13 = vpack.c.bf16 %v495_v10, %v491_v4  ;;  %v1925_v41 = vld [vmem:[%s2368_s5 + $0x28] sm:$0xff]   ;;  %v1928_v44 = vld [vmem:[%s2368_s5 + $0x80] sm:$0xff]   ;;  %v1929_v45 = vld [vmem:[%s2368_s5 + $0x78] sm:$0xff]  }
  0xf5   : > { %1085 = vmatprep.subr.bf16.mxu0 %v1888_v54  ;;  %1187 = vmatprep.subr.bf16.mxu1 %v1941_v2  ;;  %v1931_v47 = vld [vmem:[%s2368_s5 + $0x88] sm:$0xff]   ;;  %v1932_v48 = vld [vmem:[%s2368_s5 + $0x90] sm:$0x3f]  }
  0xf6   : > { %1174 = vmatprep.mubr.bf16.mxu1 %v501_v9  ;;  %1070 = vmatprep.mubr.bf16.mxu0 %v501_v9  ;;  %v1417_v49 = vsel %vm1415_vm2, %v1932_v48, 0 }
  0xf7   : > { %1175 = vmatmul.mubr.bf16.gmra.mrb[12].mxu1 %v500_v3  ;;  %1071 = vmatmul.mubr.bf16.gmra.mrb[12].mxu0 %v500_v3  ;;  %v604_v3 = vld [vmem:[%s2367_s4] sm:$0x7] }
  0xf8   : > { %1086 = vmatpush1.bf16.msra.mxu0 %v1886_v5  ;;  %1188 = vmatpush1.bf16.msra.mxu1 %v1889_v8  ;;  %v617_v4 = vrot.slane %v604_v3, %v307_v1  ;;  %v609_v6 = vrot.slane %v604_v3, %v299_v62  ;;  %v613_v5 = vrot.slane %v604_v3, %v303_v0 }
  0xf9   : > { %1087 = vmatprep.subr.bf16.mxu0 %v1892_v7  ;;  %1189 = vmatprep.subr.bf16.mxu1 %v1941_v2 }
  0xfa   : > { %1675 = vmatprep.mubr.msk.bf16.mxu0 %vm1021_vm1, %v499_v46  ;;  %1677 = vmatprep.mubr.msk.bf16.mxu1 %vm1021_vm1, %v499_v46  ;;  %v1930_v46 = vld [vmem:[%s2368_s5 + $0x38] sm:$0xff]  }
  0xfc   : > { %1088 = vmatpush1.bf16.msra.mxu0 %v1890_v14  ;;  %1190 = vmatpush1.bf16.msra.mxu1 %v1893_v15 }
  0xfd   : > { %1089 = vmatprep.subr.bf16.mxu0 %v1896_v16  ;;  %1191 = vmatprep.subr.bf16.mxu1 %v1941_v2 }
 0x100   : > { %1090 = vmatpush1.bf16.msra.mxu0 %v1894_v17  ;;  %1192 = vmatpush1.bf16.msra.mxu1 %v1897_v18 }
 0x101   : > { %1091 = vmatprep.subr.bf16.mxu0 %v1900_v19  ;;  %1193 = vmatprep.subr.bf16.mxu1 %v1941_v2 }
 0x104   : > { %1092 = vmatpush1.bf16.msra.mxu0 %v1898_v20  ;;  %1194 = vmatpush1.bf16.msra.mxu1 %v1901_v21 }
 0x105   : > { %1093 = vmatprep.subr.bf16.mxu0 %v1904_v22  ;;  %1195 = vmatprep.subr.bf16.mxu1 %v1941_v2 }
 0x108   : > { %1094 = vmatpush1.bf16.msra.mxu0 %v1902_v23  ;;  %1196 = vmatpush1.bf16.msra.mxu1 %v1905_v24 }
 0x109   : > { %1095 = vmatprep.subr.bf16.mxu0 %v1908_v25  ;;  %1197 = vmatprep.subr.bf16.mxu1 %v1941_v2 }
 0x10c   : > { %1096 = vmatpush1.bf16.msra.mxu0 %v1906_v26  ;;  %1198 = vmatpush1.bf16.msra.mxu1 %v1909_v27 }
 0x10d   : > { %1097 = vmatprep.subr.bf16.mxu0 %v1912_v28  ;;  %1199 = vmatprep.subr.bf16.mxu1 %v1941_v2  ;;  %v1915_v2 = vld [vmem:[%s2368_s5] sm:$0xff]  }
 0x110   : > { %1098 = vmatpush1.bf16.msra.mxu0 %v1910_v29  ;;  %1200 = vmatpush1.bf16.msra.mxu1 %v1913_v30 }
 0x111   : > { %1731 = vmatprep.subr.bf16.mxu1 %v1914_v31  ;;  %1764 = vmatprep.subr.bf16.mxu0 %v1928_v44 }
 0x113   : > { %1114 = vmatmul.mubr.bf16.vlgmr.msra.gmra.mrb[8].mxu0 %v2200_v42  ;;  %1216 = vmatmul.mubr.bf16.vlgmr.msra.gmra.mrb[16].mxu1 %v2200_v42  ;;  %v1926_v42 = vld [vmem:[%s2368_s5 + $0x70] sm:$0xff]  }
 0x114   : > { %1676 = vmatprep.mubr.msk.bf16.mxu0 %vm1021_vm1, %v503_v13  ;;  %1678 = vmatprep.mubr.msk.bf16.mxu1 %vm1021_vm1, %v503_v13 }
 0x115   : > { %1732 = vmatpush3.bf16.msra.mxu1 %v1915_v2  ;;  %1765 = vmatpush3.bf16.msra.mxu0 %v1928_v44 }
 0x116   : > { %1733 = vmatprep.subr.bf16.mxu1 %v1916_v32  ;;  %1766 = vmatprep.subr.bf16.mxu0 %v1931_v47 }
 0x119   : > { %1734 = vmatpush3.bf16.msra.mxu1 %v1917_v33  ;;  %1767 = vmatpush3.bf16.msra.mxu0 %v1931_v47 }
 0x11a   : > { %1735 = vmatprep.subr.bf16.mxu1 %v1918_v34  ;;  %1790 = vmatprep.subr.msk.bf16.mxu0 %vm1415_vm2, %v1932_v48 }
 0x11b   : > { %1124 = vmatmul.mubr.bf16.gmra.mrb[12].mxu0 %v502_v12  ;;  %1224 = vmatmul.mubr.bf16.gmra.mrb[20].mxu1 %v502_v12 }
 0x11d   : > { %1736 = vmatpush3.bf16.msra.mxu1 %v1919_v35  ;;  %1769 = vmatpush3.bf16.msra.mxu0 %v1417_v49 }
 0x11e   : > { %1737 = vmatprep.subr.bf16.mxu1 %v1920_v36 }
 0x121   : > { %1738 = vmatpush3.bf16.msra.mxu1 %v1921_v37 }
 0x122   : > { %1739 = vmatprep.subr.bf16.mxu1 %v1922_v38 }
 0x125   : > { %1740 = vmatpush3.bf16.msra.mxu1 %v1923_v39 }
 0x126   : > { %1741 = vmatprep.subr.bf16.mxu1 %v1924_v40 }
 0x129   : > { %1742 = vmatpush3.bf16.msra.mxu1 %v1925_v41 }
 0x12a   : > { %1743 = vmatprep.subr.bf16.mxu1 %v1926_v42 }
 0x12d   : > { %1744 = vmatpush3.bf16.msra.mxu1 %v1927_v43 }
 0x12e   : > { %1745 = vmatprep.subr.bf16.mxu1 %v1929_v45 }
 0x131   : > { %1746 = vmatpush3.bf16.msra.mxu1 %v1930_v46 }
 0x1c2   : > { %v1719_v50 = vpop.f32.mrb[8].mxu1 }
 0x1c3   : > { %v1720_v51 = vpop.f32.mrb[9].mxu1 }
 0x1c4   : > { %v1721_v52 = vadd.f32 %v1720_v51, %v1719_v50  ;;  %v1722_v53 = vpop.f32.mrb[10].mxu1 }
 0x1c5   : > { %v1723_v54 = vpop.f32.mrb[11].mxu1 }
 0x1c6   : > { %v1724_v55 = vadd.f32 %v1723_v54, %v1722_v53  ;;  %v1169_v8 = vadd.f32 %v1721_v52, %v617_v4 }
 0x1c8   : > { %v1172_v14 = vadd.f32 %v1724_v55, %v617_v4 }
 0x1ca   : > { %v1725_v56 = vpop.f32.mrb[12].mxu1 }
 0x1cb   : > { %v1726_v57 = vpop.f32.mrb[13].mxu1 }
 0x1cc   : > { %v1727_v58 = vadd.f32 %v1726_v57, %v1725_v56  ;;  %v1728_v59 = vpop.f32.mrb[14].mxu1  ;;  %v1679_v57 = vld [vmem:[%s2369_s6] ss:$0 sm:$0xff] }
 0x1cd   : > { %v1729_v60 = vpop.f32.mrb[15].mxu1 }
 0x1ce   : > { %v1730_v63 = vadd.f32 %v1729_v60, %v1728_v59  ;;  %v1177_v27 = vadd.f32 %v1727_v58, %v617_v4 }
 0x1d0   : > { %v1180_v34 = vadd.f32 %v1730_v63, %v617_v4 }
 0x1e6   : > { %v1115_v9 = vpop.f32.mrb[8].mxu0  ;;  %v1217_v11 = vpop.f32.mrb[16].mxu1 }
 0x1e7   : > { %v1774_v7 = vadd.f32 %v1115_v9, %v609_v6  ;;  %v1218_v10 = vadd.f32 %v1217_v11, %v1169_v8  ;;  %v1117_v12 = vpop.f32.mrb[9].mxu0  ;;  %v1219_v13 = vpop.f32.mrb[17].mxu1 }
 0x1e8   : > { %v1775_v15 = vadd.f32 %v1117_v12, %v613_v5  ;;  %v1119_v16 = vpop.f32.mrb[10].mxu0  ;;  %v1220_v17 = vpop.f32.mrb[18].mxu1 }
 0x1e9   : > { %v1776_v18 = vadd.f32 %v1119_v16, %v609_v6  ;;  %v1221_v19 = vadd.f32 %v1220_v17, %v1172_v14  ;;  %v1121_v1 = vpop.f32.mrb[11].mxu0  ;;  %v1222_v20 = vpop.f32.mrb[19].mxu1  ;;  %v1232_v62 = vmax.f32 %v1774_v7, 0.0  ;;  %v1234_v22 = vmax.f32 %v1218_v10, 0.0 }
 0x1ea   : > { %v1777_v21 = vadd.f32 %v1121_v1, %v613_v5  ;;  %v1233_v23 = vmax.f32 %v1775_v15, 0.0 }
 0x1eb   : > { %v1235_v61 = vmax.f32 %v1776_v18, 0.0  ;;  %v1237_v0 = vmax.f32 %v1221_v19, 0.0 }
 0x1ec   : > { %v1236_v24 = vmax.f32 %v1777_v21, 0.0 }
 0x1ed   : > { %v1244_v25 = vpack.c.bf16 %v1235_v61, %v1232_v62  ;;  %v1246_v26 = vpack.c.bf16 %v1237_v0, %v1234_v22 }
 0x1ee   : > { %v1245_v28 = vpack.c.bf16 %v1236_v24, %v1233_v23  ;;  %v1125_v29 = vpop.f32.mrb[12].mxu0  ;;  %v1225_v30 = vpop.f32.mrb[20].mxu1 }
 0x1ef   : > { %v1778_v31 = vadd.f32 %v1125_v29, %v609_v6  ;;  %v1226_v2 = vadd.f32 %v1225_v30, %v1177_v27  ;;  %v1127_v32 = vpop.f32.mrb[13].mxu0  ;;  %v1227_v33 = vpop.f32.mrb[21].mxu1  ;;  %1770 = vmatprep.mubr.msk.bf16.mxu0 %vm1408_vm3, %v1246_v26 }
 0x1f0   : > { %v1779_v35 = vadd.f32 %v1127_v32, %v613_v5  ;;  %v1129_v36 = vpop.f32.mrb[14].mxu0  ;;  %v1228_v37 = vpop.f32.mrb[22].mxu1  ;;  %1451 = vmatprep.mubr.bf16.mxu1 %v1245_v28 }
 0x1f1   : > { %v1780_v38 = vadd.f32 %v1129_v36, %v609_v6  ;;  %v1229_v39 = vadd.f32 %v1228_v37, %v1180_v34  ;;  %v1131_v40 = vpop.f32.mrb[15].mxu0  ;;  %v1230_v41 = vpop.f32.mrb[23].mxu1  ;;  %1452 = vmatmul.mubr.bf16.vlgmr.msra.gmra.mrb[24].mxu1 %v1244_v25  ;;  %v1238_v43 = vmax.f32 %v1778_v31, 0.0  ;;  %v1240_v44 = vmax.f32 %v1226_v2, 0.0 }
 0x1f2   : > { %v1781_v42 = vadd.f32 %v1131_v40, %v613_v5  ;;  %v1239_v47 = vmax.f32 %v1779_v35, 0.0 }
 0x1f3   : > { %v1241_v45 = vmax.f32 %v1780_v38, 0.0  ;;  %v1243_v46 = vmax.f32 %v1229_v39, 0.0 }
 0x1f4   : > { %v1242_v48 = vmax.f32 %v1781_v42, 0.0 }
 0x1f5   : > { %v1247_v49 = vpack.c.bf16 %v1241_v45, %v1238_v43  ;;  %v1249_v50 = vpack.c.bf16 %v1243_v46, %v1240_v44 }
 0x1f6   : > { %v1248_v51 = vpack.c.bf16 %v1242_v48, %v1239_v47 }
 0x1f7   : > { %1771 = vmatmul.mubr.msk.bf16.vlgmr.msra.gmra.mrb[16].mxu0 %vm1408_vm3, %v1249_v50 }
 0x1f8   : > { %1459 = vmatprep.mubr.bf16.mxu1 %v1248_v51 }
 0x1f9   : > { %1460 = vmatmul.mubr.bf16.gmra.mrb[28].mxu1 %v1247_v49 }
 0x2c4   : > { %v1747_v52 = vpop.f32.mrb[24].mxu1 }
 0x2c5   : > { %v1748_v53 = vpop.f32.mrb[25].mxu1 }
 0x2c6   : > { %v1749_v54 = vadd.f32 %v1748_v53, %v1747_v52  ;;  %v1750_v55 = vpop.f32.mrb[26].mxu1 }
 0x2c7   : > { %v1751_v56 = vpop.f32.mrb[27].mxu1 }
 0x2c8   : > { %v1752_v58 = vadd.f32 %v1751_v56, %v1750_v55  ;;  %v1454_v60 = vadd.f32 %v1749_v54, %v1679_v57 }
 0x2ca   : > { %v1772_v59 = vpop.f32.mrb[16].mxu0  ;;  %v1457_v5 = vadd.f32 %v1752_v58, %v1679_v57 }
 0x2cb   : > { %v1502_v63 = vpop.f32.mrb[17].mxu0 }
 0x2cc   : > { %v1503_v3 = vadd.f32 %v1502_v63, %v1454_v60  ;;  %v1753_v4 = vpop.f32.mrb[28].mxu1  ;;  %v1773_v6 = vpop.f32.mrb[18].mxu0 }
 0x2cd   : > { %v1754_v8 = vpop.f32.mrb[29].mxu1  ;;  %v1505_v9 = vpop.f32.mrb[19].mxu0 }
 0x2ce   : > { %1517 = vst [vmem:[%s280_s11] sm:$0xff] %v1503_v3  ;;  %v1755_v11 = vadd.f32 %v1754_v8, %v1753_v4  ;;  %v1506_v7 = vadd.f32 %v1505_v9, %v1457_v5  ;;  %v1756_v10 = vpop.f32.mrb[30].mxu1 }
 0x2cf   : > { %v1757_v12 = vpop.f32.mrb[31].mxu1 }
 0x2d0   : > { %v1462_v13 = vadd.f32 %v1755_v11, %v1679_v57  ;;  %1518 = vst [vmem:[%s280_s11 + $0x8] sm:$0xff] %v1506_v7  ;;  %v1758_v14 = vadd.f32 %v1757_v12, %v1756_v10 }
 0x2d2   : > { %v1511_v15 = vadd.f32 %v1772_v59, %v1462_v13  ;;  %v1465_v16 = vadd.f32 %v1758_v14, %v1679_v57 }
 0x2d4   : > { %1519 = vst [vmem:[%s280_s11 + $0x10] sm:$0xff] %v1511_v15  ;;  %v1514_v17 = vadd.f32 %v1773_v6, %v1465_v16 }
 0x2d6   : > { %1520 = vst [vmem:[%s280_s11 + $0x18] sm:$0xff] %v1514_v17 }
 0x2d7 PF: > { %s17_s24 = sadd.s32 1, %s1939_s24  }
 0x2d8   : > { %p14_p4 = scmp.ge.s32.totalorder %s17_s24, 4  }
 0x2da   :  { %16 = sbr.rel (!%p14_p4) target bundleno = 1 (0x1), region = 78 }

</bundles_post_ra>
